<compile_context>
chip_gen: v7x
topology: tpu7x:2x2x1
jax: 0.10.0
libtpu: 0.0.40
codegen_flags: <defaults>
</compile_context>

<pallas_src>
import functools

import jax
import jax.numpy as jnp
from jax.experimental import pallas as pl
from jax.experimental.pallas import tpu as pltpu


_NEG_PAD = -1.0e30   # padded vocab columns; exp(pad - max) underflows to 0 in the lse
_LANE = 128
_SUBLANE = 8


def _round_up(x, m):
    return ((x + m - 1) // m) * m


def prepare_weight(weight):
    """Pad the vocab (lane) dim of the embedding table to a multiple of 128.

    Called ONCE at init time (not per forward call).  Padded columns hold a
    large negative value so they vanish from the logsumexp.
    """
    V = weight.shape[0]
    Vp = _round_up(max(V, _LANE), _LANE)
    w = weight.astype(jnp.float32)
    if Vp != V:
        pad = jnp.full((V, Vp - V), _NEG_PAD, dtype=jnp.float32)
        w = jnp.concatenate([w, pad], axis=1)
    return w


def _bigram_chunk_kernel(ids_ref, labels_ref, w_ref, logits_ref, loss_ref, *,
                         rows_per_chunk, chunks_per_stripe, n_valid):
    """One grid step = one chunk of `rows_per_chunk` token rows.

    ids_ref    : (N_pad,) int32 SMEM  (scalar-prefetched token ids)
    labels_ref : (R, 1)   int32 VMEM  (labels for this chunk)
    w_ref      : (V, Vp)  f32   VMEM-resident padded embedding table
    logits_ref : (R, Vp)  f32   output tile (this chunk's logits rows)
    loss_ref   : (1,1,1)  f32   per-stripe resident loss accumulator
    """
    p = pl.program_id(0)                       # stripe (parallel axis)
    c = pl.program_id(1)                       # chunk within stripe (reduction)
    base = (p * chunks_per_stripe + c) * rows_per_chunk

    # In-VMEM row gather: logits[r, :] = W[ids[base + r], :]
    def gather(r, carry):
        tok = ids_ref[base + r]
        logits_ref[pl.ds(r, 1), :] = w_ref[pl.ds(tok, 1), :]
        return carry
    jax.lax.fori_loop(0, rows_per_chunk, gather, 0)

    chunk = logits_ref[...]                    # (R, Vp) f32
    labels = labels_ref[...]                   # (R, 1)  int32

    # Vectorized cross-entropy for the whole chunk (iota hoisted out of any loop).
    col = jax.lax.broadcasted_iota(jnp.int32, chunk.shape, 1)
    correct = jnp.sum(jnp.where(col == labels, chunk, 0.0), axis=-1, keepdims=True)
    m = jnp.max(chunk, axis=-1, keepdims=True)
    lse = m + jnp.log(jnp.sum(jnp.exp(chunk - m), axis=-1, keepdims=True))

    # Mask rows beyond the real N (grid padding) so they do not contribute.
    row = base + jax.lax.broadcasted_iota(jnp.int32, (rows_per_chunk, 1), 0)
    contrib = jnp.where(row < n_valid, lse - correct, 0.0)
    partial = jnp.sum(contrib, axis=0, keepdims=True)          # (1, 1)

    @pl.when(c == 0)
    def _init():
        loss_ref[...] = jnp.zeros_like(loss_ref)

    loss_ref[...] += partial                                    # broadcasts to (1,1,1)


def bigram_forward(inputs, labels, w_padded, *, rows_per_chunk=256, num_stripes=2):
    """Fused embedding-lookup + cross-entropy forward.

    inputs, labels : (B, T) integer token ids; labels must lie in [0, V).
    w_padded       : (V, Vp) f32 table from prepare_weight().

    Returns (logits, loss):
      logits : (N_pad, Vp) f32; rows [:B*T] / cols [:V] are the real logits.
               (Padded region is returned as-is to avoid an extra HBM copy.)
      loss   : scalar f32 mean cross-entropy.
    """
    V, Vp = w_padded.shape
    B, T = inputs.shape
    N = B * T

    P = max(1, int(num_stripes))               # loss stripes ("parallel" axis; v7x megacore)
    rows_per_stripe = pl.cdiv(N, P)
    R = max(_SUBLANE, min(_round_up(rows_per_stripe, _SUBLANE),
                          _round_up(rows_per_chunk, _SUBLANE)))

    # VMEM budget (conservative: assume table + logits + labels all double-buffered).
    budget = 40 << 20                          # safe under v7x's 64 MiB physical VMEM
    w_bytes = 2 * V * Vp * 4
    if w_bytes > budget:
        # TODO(synk): large-V fallback -- stream W rows from HBM via a data-dependent
        # BlockSpec gather (pipeline_mode=pl.Buffered(4)), optionally in bf16,
        # instead of keeping the whole table VMEM-resident.
        raise NotImplementedError("vocab too large for the VMEM-resident table path")
    while R > _SUBLANE and w_bytes + 2 * R * (Vp + _LANE) * 4 > budget:
        R = max(_SUBLANE, _round_up(R // 2, _SUBLANE))

    C = pl.cdiv(rows_per_stripe, R)            # chunks per stripe (reduction axis)
    N_pad = P * C * R

    ids = inputs.reshape(N).astype(jnp.int32)
    lab = labels.reshape(N).astype(jnp.int32)
    if N_pad != N:
        ids = jnp.pad(ids, (0, N_pad - N))     # padded rows use token 0; masked in-kernel
        lab = jnp.pad(lab, (0, N_pad - N))
    lab2 = lab.reshape(N_pad, 1)

    vmem_needed = w_bytes + 2 * R * Vp * 4 + 2 * R * _LANE * 4 + (2 << 20)
    vmem_limit = int(min(max(vmem_needed, 16 << 20), 48 << 20))

    kernel = functools.partial(
        _bigram_chunk_kernel,
        rows_per_chunk=R, chunks_per_stripe=C, n_valid=N)

    logits_p, partials = pl.pallas_call(
        kernel,
        out_shape=(
            jax.ShapeDtypeStruct((N_pad, Vp), jnp.float32),
            jax.ShapeDtypeStruct((P, 1, 1), jnp.float32),
        ),
        grid_spec=pltpu.PrefetchScalarGridSpec(
            num_scalar_prefetch=1,             # token ids -> SMEM
            grid=(P, C),
            in_specs=[
                # Labels for the current chunk.
                pl.BlockSpec((R, 1), lambda p, c, ids_ref: (p * C + c, 0)),
                # Whole padded table; constant block index => fetched from HBM
                # once and kept VMEM-resident for the entire grid.
                pl.BlockSpec((V, Vp), lambda p, c, ids_ref: (0, 0)),
            ],
            out_specs=(
                pl.BlockSpec((R, Vp), lambda p, c, ids_ref: (p * C + c, 0)),
                # One resident accumulator per stripe.
                pl.BlockSpec((1, 1, 1), lambda p, c, ids_ref: (p, 0, 0)),
            ),
        ),
        compiler_params=pltpu.CompilerParams(
            # Stripe axis is parallel (both TCs on v7x, harmless on v5e/v6e);
            # the chunk axis carries the per-stripe loss reduction -> arbitrary.
            dimension_semantics=("parallel", "arbitrary"),
            vmem_limit_bytes=vmem_limit,
        ),
    )(ids, lab2, w_padded)

    # Tiny finalize outside the kernel: sum per-stripe partials, divide by N.
    loss = jnp.sum(partials) / N
    # TODO(synk): add a loss-only mode (gather into a VMEM scratch, skip the
    # logits output) when the caller only needs the scalar loss.
    return logits_p, loss


if __name__ == "__main__":
    VOCAB = 65            # char-level vocab; non-multiple of 128 exercises lane padding
    B, T = 32, 8          # BATCH=32 as in the module, short context

    key = jax.random.PRNGKey(0)
    k_w, k_x, k_y = jax.random.split(key, 3)

    # nn.Embedding(V, V) default init N(0, 1); the module scales weights by 0.15.
    weight = jax.random.normal(k_w, (VOCAB, VOCAB), dtype=jnp.float32) * 0.15
    inputs = jax.random.randint(k_x, (B, T), 0, VOCAB, dtype=jnp.int32)
    labels = jax.random.randint(k_y, (B, T), 0, VOCAB, dtype=jnp.int32)

    w_padded = prepare_weight(weight)          # one-time init cost, not per call
    logits, loss = bigram_forward(inputs, labels, w_padded)
    jax.block_until_ready((logits, loss))

    # Pure-JAX reference check.
    N = B * T
    ref_logits = weight[inputs.reshape(-1)]
    ref_lse = jax.nn.logsumexp(ref_logits, axis=-1)
    ref_correct = jnp.take_along_axis(ref_logits, labels.reshape(-1, 1), axis=-1)[:, 0]
    ref_loss = jnp.mean(ref_lse - ref_correct)

    assert logits.shape[0] >= N and logits.shape[1] >= VOCAB
    assert jnp.allclose(logits[:N, :VOCAB], ref_logits, atol=1e-5)
    assert jnp.allclose(loss, ref_loss, atol=1e-4)

    print("KERNEL_OK")
</pallas_src>

<mosaic_0001>
module attributes {stable_mosaic.version = 11 : i64} {
  func.func @_bigram_chunk_kernel(%arg0: i32, %arg1: i32, %arg2: memref<256xi32, #tpu.memory_space<smem>>, %arg3: memref<128x1xi32, #tpu.memory_space<vmem>>, %arg4: memref<65x128xf32, #tpu.memory_space<vmem>>, %arg5: memref<128x128xf32, #tpu.memory_space<vmem>>, %arg6: memref<1x1x1xf32, #tpu.memory_space<vmem>>) attributes {dimension_semantics = [#tpu.dimension_semantics<parallel>, #tpu.dimension_semantics<arbitrary>], iteration_bounds = array<i64: 2, 1>, scalar_prefetch = 1 : i64, scratch_operands = 0 : i64, tpu.core_type = #tpu.core_type<tc>, window_params = [{transform_indices = @transform_0, window_bounds = array<i64: 128, 1>}, {pipeline_mode = #tpu.pipeline_mode<synchronous>, transform_indices = @transform_1, window_bounds = array<i64: 65, 128>}, {transform_indices = @transform_2, window_bounds = array<i64: 128, 128>}, {transform_indices = @transform_3, window_bounds = array<i64: 1, 1, 1>}]} {
    %c1_i32 = arith.constant 1 : i32
    %0 = arith.muli %arg0, %c1_i32 : i32
    %1 = arith.addi %0, %arg1 : i32
    %c128_i32 = arith.constant 128 : i32
    %2 = arith.muli %1, %c128_i32 : i32
    %c0_i32 = arith.constant 0 : i32
    %c128_i32_0 = arith.constant 128 : i32
    %3 = arith.addi %c0_i32, %c128_i32_0 : i32
    %c1_i32_1 = arith.constant 1 : i32
    scf.for %arg7 = %c0_i32 to %3 step %c1_i32_1  : i32 {
      %39 = arith.addi %2, %arg7 : i32
      %40 = arith.index_cast %39 : i32 to index
      %41 = memref.load %arg2[%40] : memref<256xi32, #tpu.memory_space<smem>>
      %42 = arith.index_cast %41 : i32 to index
      %c0_19 = arith.constant 0 : index
      %43 = vector.load %arg4[%42, %c0_19] : memref<65x128xf32, #tpu.memory_space<vmem>>, vector<1x128xf32>
      %44 = arith.index_cast %arg7 : i32 to index
      %c0_20 = arith.constant 0 : index
      %45 = vector.load %arg5[%44, %c0_20] : memref<128x128xf32, #tpu.memory_space<vmem>>, vector<1x128xf32>
      tpu.vector_store %arg5[%44, %c0_20], %43 {strides = array<i32>} : memref<128x128xf32, #tpu.memory_space<vmem>>, vector<1x128xf32>,
    }
    %c128_i32_2 = arith.constant 128 : i32
    %c0 = arith.constant 0 : index
    %c0_3 = arith.constant 0 : index
    %4 = vector.load %arg5[%c0, %c0_3] : memref<128x128xf32, #tpu.memory_space<vmem>>, vector<128x128xf32>
    %c0_4 = arith.constant 0 : index
    %c0_5 = arith.constant 0 : index
    %5 = vector.load %arg3[%c0_4, %c0_5] : memref<128x1xi32, #tpu.memory_space<vmem>>, vector<128x1xi32>
    %6 = tpu.iota {dimensions = array<i32: 1>} : vector<128x128xi32>
    %7 = vector.broadcast %5 : vector<128x1xi32> to vector<128x128xi32>
    %8 = arith.cmpi eq, %6, %7 : vector<128x128xi32>
    %cst = arith.constant 0.000000e+00 : f32
    %9 = vector.broadcast %cst : f32 to vector<128x128xf32>
    %10 = arith.select %8, %4, %9 : vector<128x128xi1>, vector<128x128xf32>
    %cst_6 = arith.constant dense<0.000000e+00> : vector<128xf32>
    %11 = vector.multi_reduction <add>, %10, %cst_6 [1] : vector<128x128xf32> to vector<128xf32>
    %12 = vector.shape_cast %11 : vector<128xf32> to vector<128x1xf32>
    %cst_7 = arith.constant dense<0xFF800000> : vector<128xf32>
    %13 = vector.multi_reduction <maximumf>, %4, %cst_7 [1] : vector<128x128xf32> to vector<128xf32>
    %14 = vector.shape_cast %13 : vector<128xf32> to vector<128x1xf32>
    %15 = vector.broadcast %14 : vector<128x1xf32> to vector<128x128xf32>
    %16 = arith.subf %4, %15 : vector<128x128xf32>
    %17 = math.exp %16 : vector<128x128xf32>
    %cst_8 = arith.constant dense<0.000000e+00> : vector<128xf32>
    %18 = vector.multi_reduction <add>, %17, %cst_8 [1] : vector<128x128xf32> to vector<128xf32>
    %19 = vector.shape_cast %18 : vector<128xf32> to vector<128x1xf32>
    %20 = math.log %19 : vector<128x1xf32>
    %21 = arith.addf %14, %20 : vector<128x1xf32>
    %22 = tpu.iota {dimensions = array<i32: 0>} : vector<128x1xi32>
    %23 = vector.broadcast %2 : i32 to vector<128x1xi32>
    %24 = arith.addi %23, %22 : vector<128x1xi32>
    %c256_i32 = arith.constant 256 : i32
    %25 = vector.broadcast %c256_i32 : i32 to vector<128x1xi32>
    %26 = arith.cmpi slt, %24, %25 : vector<128x1xi32>
    %27 = arith.subf %21, %12 : vector<128x1xf32>
    %cst_9 = arith.constant 0.000000e+00 : f32
    %28 = vector.broadcast %cst_9 : f32 to vector<128x1xf32>
    %29 = arith.select %26, %27, %28 : vector<128x1xi1>, vector<128x1xf32>
    %cst_10 = arith.constant dense<0.000000e+00> : vector<1xf32>
    %30 = vector.multi_reduction <add>, %29, %cst_10 [0] : vector<128x1xf32> to vector<1xf32>
    %31 = vector.shape_cast %30 : vector<1xf32> to vector<1x1xf32>
    %c0_i32_11 = arith.constant 0 : i32
    %32 = arith.cmpi eq, %arg1, %c0_i32_11 : i32
    %33 = arith.extui %32 : i1 to i32
    %c0_i32_12 = arith.constant 0 : i32
    %34 = arith.cmpi ne, %33, %c0_i32_12 : i32
    scf.if %34 {
      %cst_19 = arith.constant 0.000000e+00 : f32
      %39 = vector.broadcast %cst_19 : f32 to vector<1x1x1xf32>
      %c0_20 = arith.constant 0 : index
      %c0_21 = arith.constant 0 : index
      %c0_22 = arith.constant 0 : index
      %40 = vector.load %arg6[%c0_20, %c0_21, %c0_22] : memref<1x1x1xf32, #tpu.memory_space<vmem>>, vector<1x1x1xf32>
      tpu.vector_store %arg6[%c0_20, %c0_21, %c0_22], %39 {strides = array<i32>} : memref<1x1x1xf32, #tpu.memory_space<vmem>>, vector<1x1x1xf32>,
    } else {
    }
    %c0_13 = arith.constant 0 : index
    %c0_14 = arith.constant 0 : index
    %c0_15 = arith.constant 0 : index
    %35 = vector.load %arg6[%c0_13, %c0_14, %c0_15] : memref<1x1x1xf32, #tpu.memory_space<vmem>>, vector<1x1x1xf32>
    %36 = vector.shape_cast %31 : vector<1x1xf32> to vector<1x1x1xf32>
    %37 = arith.addf %35, %36 : vector<1x1x1xf32>
    %c0_16 = arith.constant 0 : index
    %c0_17 = arith.constant 0 : index
    %c0_18 = arith.constant 0 : index
    %38 = vector.load %arg6[%c0_16, %c0_17, %c0_18] : memref<1x1x1xf32, #tpu.memory_space<vmem>>, vector<1x1x1xf32>
    tpu.vector_store %arg6[%c0_16, %c0_17, %c0_18], %37 {strides = array<i32>} : memref<1x1x1xf32, #tpu.memory_space<vmem>>, vector<1x1x1xf32>,
    return
  }
  func.func @transform_0(%arg0: i32, %arg1: i32, %arg2: memref<256xi32, #tpu.memory_space<smem>>) -> (i32, i32) {
    %c1_i32 = arith.constant 1 : i32
    %0 = arith.muli %arg0, %c1_i32 : i32
    %1 = arith.addi %0, %arg1 : i32
    %c0_i32 = arith.constant 0 : i32
    %c0_i32_0 = arith.constant 0 : i32
    return %1, %c0_i32 : i32, i32
  }
  func.func @transform_1(%arg0: i32, %arg1: i32, %arg2: memref<256xi32, #tpu.memory_space<smem>>) -> (i32, i32) {
    %c0_i32 = arith.constant 0 : i32
    %c0_i32_0 = arith.constant 0 : i32
    %c0_i32_1 = arith.constant 0 : i32
    return %c0_i32, %c0_i32_0 : i32, i32
  }
  func.func @transform_2(%arg0: i32, %arg1: i32, %arg2: memref<256xi32, #tpu.memory_space<smem>>) -> (i32, i32) {
    %c1_i32 = arith.constant 1 : i32
    %0 = arith.muli %arg0, %c1_i32 : i32
    %1 = arith.addi %0, %arg1 : i32
    %c0_i32 = arith.constant 0 : i32
    %c0_i32_0 = arith.constant 0 : i32
    return %1, %c0_i32 : i32, i32
  }
  func.func @transform_3(%arg0: i32, %arg1: i32, %arg2: memref<256xi32, #tpu.memory_space<smem>>) -> (i32, i32, i32) {
    %c0_i32 = arith.constant 0 : i32
    %c0_i32_0 = arith.constant 0 : i32
    %c0_i32_1 = arith.constant 0 : i32
    return %arg0, %c0_i32, %c0_i32_0 : i32, i32, i32
  }
}

</mosaic_0001>

<bundles_post_ra>
// kernel: tpu_custom_call.1
= control target key start
LH: loop header
LB: loop body
LE: loop exit
PB: predicated region body
PF: predicated region fallthrough
CT: control target
= control target key end

     0   :  { %s1441_s0 = inlined_call_operand.vmem [shape: s32[256], index: 0, kind: input, shape index: {}]   ;;  %s1442_s1 = inlined_call_operand.vmem [shape: s32[256,1], index: 1, kind: input, shape index: {}]   ;;  %s1443_s2 = inlined_call_operand.vmem [shape: f32[65,128], index: 2, kind: input, shape index: {}]   ;;  %s1444_s3 = inlined_call_operand.hbm [shape: f32[256,128], index: 3, kind: output, shape index: {0}]   ;;  %s1445_s4 = inlined_call_operand.vmem [shape: f32[2,1,1], index: 4, kind: output, shape index: {1}]  }
   0x1   :  { %s10_s17 = sshll.u32 %s1441_s0, 4  ;;  %s11_s17 = int_to_ptr.vmem [resolvable:$true] %s10_s17 }
   0x2   :  { %s910_s18 = scalar_lea.vmem %s11_s17, 32  ;;  %p915_p1 = scmp.lt.s32.totalorder %s11_s17, %s11_s17 }
   0x3   :  { %p911_p0 = scmp.ne.s32.totalorder %s11_s17, %s910_s18  ;;  %p916_p2 = scmp.lt.s32.totalorder %s910_s18, %s910_s18 }
   0x5   :  { %p917_p3 = por %p916_p2, %p915_p1 }
   0x7   :  { %p918_p4 = pnand %p917_p3, %p911_p0 }
   0x9   :  { %921 = shalt.err (!%p918_p4)  }
   0xa   :  { %s1012_s19 = smov [#allocation3]  }
   0xb   :  { %13 = dma.vmem_to_smem %s11_s17, 32, %s1012_s19, [#allocation2] }
   0xc   :  { %978 = dma.done.wait [#allocation2], 32 }
   0xd   :  { %979 = vsyncadd [#allocation2], 4294967264 }
   0xe   :  { %15 = sfence }
   0xf   :  { %16 = vsyncpa [#allocation5], 0 }
  0x10   :  { %18 = vsyncpa [#allocation5 + $0x1], 0  ;;  %s1046_s20 = smov 0   ;;  %s1048_s21 = smov 0  }
  0x11   :  { %s1050_s0 = smov 0   ;;  %s1052_s22 = smov 0  }
  0x12   :  { %s1054_s23 = smov 0   ;;  %s1056_s24 = smov 0  }
  0x13 LB: > { %s761_s25 = sadd.s32 4294967295, %s1006_s24   ;;  %s762_s26 = sadd.s32 4294967294, %s1006_s24   ;;  %s1006_s24 = sphi %s1056_s24, %s24_s24   ;;  %s1002_s23 = sphi %s1054_s23, %s1452_s23   ;;  %s998_s22 = sphi %s1052_s22, %s1451_s22   ;;  %s994_s0 = sphi %s1050_s0, %s1450_s0   ;;  %s990_s21 = sphi %s1048_s21, %s1449_s21   ;;  %s986_s20 = sphi %s1046_s20, %s1448_s20  }
  0x14   : > { %s36_s27 = sadd.s32 1, %s1002_s23  ;;  %s94_s28 = sadd.s32 1, %s994_s0 }
  0x15   : > { %p38_p5 = scmp.ge.s32.totalorder %s36_s27, 2  ;;  %p104_p6 = scmp.ne.s32.totalorder %s994_s0, %s990_s21 }
  0x16   : > { %p105_p7 = scmp.eq.s32.totalorder %s761_s25, 1  ;;  %p110_p8 = scmp.ne.s32.totalorder %s990_s21, %s986_s20 }
  0x17   : > { %s1454_s27 = smov (%p38_p5, %s36_s27), 0  ;;  %p111_p10 = scmp.eq.s32.totalorder %s762_s26, 1 }
  0x18   : > { %p1086_p9 = por %p105_p7, %p104_p6  ;;  %s91_s30 = ssub.s32 %s1002_s23, %s1454_s27 }
  0x19   : > { %p765_p11 = scmp.ge.s32.totalorder %s1006_s24, 1  ;;  %p92_p12 = scmp.eq.s32.totalorder %s91_s30, 0 }
  0x1a   : > { %p1093_p13 = por %p111_p10, %p110_p8  ;;  %p169_p0 = scmp.lt.s32.totalorder %s1006_s24, 3 }
  0x1b   : > { %s1099_s6 = scalar_select %p92_p12, %s994_s0, %s94_s28  }
  0x1c   : > { %p170_p1 = pnand %p765_p11, %p169_p0 }
  0x1d   : > { %s189_s7 = sand.u32 (!%p170_p1), 1, %s990_s21   ;;  %s767_s8 = sshll.u32 (!%p170_p1), %s998_s22, 4 }
  0x1e   : > { %173 = sbr.rel (%p170_p1) target bundleno = 460 (0x1cc), region = 28  ;;  %s766_s9 = sshll.u32 (!%p170_p1), %s189_s7, 7 }
  0x1f   : > { %p199_p2 = scmp.lt.s32.totalorder (!%p170_p1), %s767_s8, 31  ;;  %p207_p3 = scmp.lt.s32.totalorder (!%p170_p1), %s998_s22, 1 }
  0x20   : > { %s769_s12 = sshll.u32 (!%p170_p1), %s998_s22, 7  ;;  %s1118_s19 = scalar_lea.vmem (!%p170_p1), [#allocation4], %s766_s9 }
  0x21   : > { %s1008_s25 = smov (!%p170_p1), 0  }
  0x25   : > { %s1456_s8 = smov (!%p199_p2, %s767_s8), 31 }
  0x26   : > { %s208_s10 = scalar_select %p207_p3, %s998_s22, 1 }
  0x27   : > { %s768_s11 = sshll.u32 %s1456_s8, 3 }
  0x28   : > { %s1111_s15 = scalar_lea.vmem %s1442_s1, %s768_s11  ;;  %s1116_s18 = scalar_lea.vmem %s1445_s4, %s208_s10 }
  0x29 LB: >> { %s218_s26 = sadd.s32 %s1010_s25, %s769_s12  ;;  %s222_s30 = scalar_lea.vmem %s1118_s19, %s1010_s25 [#allocation4]  ;;  %s1010_s25 = sphi %s1008_s25, %s217_s25  }
  0x2a   : >> { %s219_s28 = sld [smem:[#allocation3 + %s218_s26]]  ;;  %s217_s25 = sadd.s32 1, %s1010_s25  }
  0x2b   : >> { %p214_p4 = scmp.ge.s32.totalorder %s217_s25, 128  }
  0x2c   : > { %v1013_v5 = vmov (%p214_p4), 0   ;;  %v241_v18 = vld [vmem:[%s1111_s15 + $0x8] sm:$0xff] (%p214_p4)  ;;  %v242_v19 = vld [vmem:[%s1111_s15 + $0x10] sm:$0xff] (%p214_p4)  ;;  %v240_v20 = vld [vmem:[%s1111_s15] sm:$0xff] (%p214_p4)  ;;  %v256_v48 = vlaneseq (%p214_p4)  ;;  %s775_s9 = sshll.u32 (%p214_p4), %s998_s22, 11  ;;  %s661_s10 = sshll.u32 (%p214_p4), %s1118_s19, 4  ;;  %s1314_s10 = int_to_ptr.vmem [resolvable:$true] %s661_s10 }
  0x2d   : > { %216 = sbr.rel (!%p214_p4) target bundleno = 41 (0x29), region = 88  ;;  %845 = vset.pattern.permute.xlu1 (%p214_p4), %v1013_v5  ;;  %844 = vset.pattern.permute.xlu0 (%p214_p4), %v1013_v5  ;;  %v243_v21 = vld [vmem:[%s1111_s15 + $0x18] sm:$0xff] (%p214_p4)  ;;  %v249_v22 = vld [vmem:[%s1111_s15 + $0x48] sm:$0xff] (%p214_p4)  ;;  %v244_v23 = vld [vmem:[%s1111_s15 + $0x20] sm:$0xff] (%p214_p4)  ;;  %s1312_s16 = scalar_lea.hbm (%p214_p4), %s1444_s3, %s775_s9 }
  0x2e   : > { %v251_v24 = vld [vmem:[%s1111_s15 + $0x58] sm:$0xff] (%p214_p4)  ;;  %v245_v25 = vld [vmem:[%s1111_s15 + $0x28] sm:$0xff] (%p214_p4)  ;;  %v246_v27 = vld [vmem:[%s1111_s15 + $0x30] sm:$0xff] (%p214_p4)  ;;  %v1241_v53 = vand.u32 (%p214_p4), 127, %v256_v48  ;;  %s1318_s17 = scalar_lea.sflag (%p214_p4), [#allocation5], %s189_s7  ;;  %s922_s25 = scalar_lea.vmem (%p214_p4), %s1314_s10, 2048 }
  0x2f   : > { %v253_v26 = vld [vmem:[%s1111_s15 + $0x68] sm:$0xff] (%p214_p4)  ;;  %v255_v28 = vld [vmem:[%s1111_s15 + $0x78] sm:$0xff] (%p214_p4)  ;;  %v248_v30 = vld [vmem:[%s1111_s15 + $0x40] sm:$0xff] (%p214_p4)  ;;  %p923_p5 = scmp.ne.s32.totalorder (%p214_p4), %s1314_s10, %s922_s25  ;;  %s1015_s26 = smov (%p214_p4), [#allocation4]  }
  0x30   : >> { %s220_s13 = scalar_lea.vmem %s1443_s2, %s219_s28  ;;  %v247_v29 = vld [vmem:[%s1111_s15 + $0x38] sm:$0xff] (%p214_p4)  ;;  %v250_v31 = vld [vmem:[%s1111_s15 + $0x50] sm:$0xff] (%p214_p4)  ;;  %v252_v32 = vld [vmem:[%s1111_s15 + $0x60] sm:$0xff] (%p214_p4) }
  0x31   : >> { %v221_v0 = vld [vmem:[%s220_s13] sm:$0x1]  ;;  %v254_v33 = vld [vmem:[%s1111_s15 + $0x70] sm:$0xff] (%p214_p4)  ;;  %p924_p6 = pnand (%p214_p4), %p923_p5, %p1086_p9 }
  0x32   : >> { %223 = vst [vmem:[%s222_s30] sm:$0x1] %v221_v0 }
  0x33   : > { %p925_p7 = pneg (%p214_p4), %p924_p6 }
  0x39   : > { %v1127_v1 = vld [vmem:[%s1118_s19 + $0x10] sm:$0xff]  ;;  %v1130_v2 = vld [vmem:[%s1118_s19] sm:$0xff]  ;;  %v1135_v3 = vld [vmem:[%s1118_s19 + $0x18] sm:$0xff] }
  0x3a   : > { %374 = vmax.xlane.f32.xlu1 %v1127_v1  ;;  %370 = vmax.xlane.f32.xlu0 %v1130_v2  ;;  %v1138_v4 = vld [vmem:[%s1118_s19 + $0x8] sm:$0xff]  ;;  %v1146_v7 = vld [vmem:[%s1118_s19 + $0x20] sm:$0xff]  ;;  %v1151_v8 = vld [vmem:[%s1118_s19 + $0x38] sm:$0xff] }
  0x3b   : > { %v1143_v6 = vld [vmem:[%s1118_s19 + $0x28] sm:$0xff]  ;;  %v1154_v9 = vld [vmem:[%s1118_s19 + $0x30] sm:$0xff]  ;;  %v1162_v11 = vld [vmem:[%s1118_s19 + $0x40] sm:$0xff] }
  0x3c   : > { %v1159_v10 = vld [vmem:[%s1118_s19 + $0x48] sm:$0xff]  ;;  %v1167_v12 = vld [vmem:[%s1118_s19 + $0x58] sm:$0xff]  ;;  %v1170_v13 = vld [vmem:[%s1118_s19 + $0x50] sm:$0xff] }
  0x3d   : > { %v1175_v14 = vld [vmem:[%s1118_s19 + $0x68] sm:$0xff]  ;;  %v1178_v15 = vld [vmem:[%s1118_s19 + $0x60] sm:$0xff]  ;;  %v1183_v16 = vld [vmem:[%s1118_s19 + $0x78] sm:$0xff] }
  0x3e   : > { %376 = vmax.xlane.f32.xlu1 %v1135_v3  ;;  %372 = vmax.xlane.f32.xlu0 %v1138_v4  ;;  %v1186_v17 = vld [vmem:[%s1118_s19 + $0x70] sm:$0xff]  ;;  %s926_s19 = sshll.u32 %s1015_s26, 4  ;;  %s927_s19 = int_to_ptr.vmem [resolvable:$false] %s926_s19 }
  0x3f   : > { %s928_s28 = scalar_lea.vmem %s927_s19, 4096  ;;  %p929_p8 = scmp.lt.s32.totalorder %s1314_s10, %s927_s19 }
  0x40   : > { %p930_p10 = scmp.lt.s32.totalorder %s928_s28, %s922_s25 }
  0x42   : > { %380 = vmax.xlane.f32.xlu1 %v1143_v6  ;;  %378 = vmax.xlane.f32.xlu0 %v1146_v7  ;;  %p931_p11 = por %p930_p10, %p929_p8 }
  0x44   : > { %p932_p12 = pnand %p931_p11, %p925_p7 }
  0x46   : > { %384 = vmax.xlane.f32.xlu1 %v1151_v8  ;;  %382 = vmax.xlane.f32.xlu0 %v1154_v9 }
  0x4a   : > { %388 = vmax.xlane.f32.xlu1 %v1159_v10  ;;  %386 = vmax.xlane.f32.xlu0 %v1162_v11 }
  0x4e   : > { %392 = vmax.xlane.f32.xlu1 %v1167_v12  ;;  %390 = vmax.xlane.f32.xlu0 %v1170_v13 }
  0x52   : > { %396 = vmax.xlane.f32.xlu1 %v1175_v14  ;;  %394 = vmax.xlane.f32.xlu0 %v1178_v15 }
  0x56   : > { %400 = vmax.xlane.f32.xlu1 %v1183_v16  ;;  %398 = vmax.xlane.f32.xlu0 %v1186_v17 }
  0x67   : > { %262 = vperm.xlu1 %845, %v241_v18  }
  0x6b   : > { %265 = vperm.xlu1 %845, %v242_v19  }
  0x6c   : > { %259 = vperm.xlu0 %844, %v240_v20  }
  0x6f   : > { %268 = vperm.xlu1 %845, %v243_v21  }
  0x70   : > { %286 = vperm.xlu0 %844, %v249_v22  }
  0x73   : > { %271 = vperm.xlu1 %845, %v244_v23  }
  0x74   : > { %292 = vperm.xlu0 %844, %v251_v24  }
  0x77   : > { %274 = vperm.xlu1 %845, %v245_v25  }
  0x78   : > { %298 = vperm.xlu0 %844, %v253_v26  }
  0x7b   : > { %277 = vperm.xlu1 %845, %v246_v27  }
  0x7c   : > { %304 = vperm.xlu0 %844, %v255_v28  }
  0x7f   : > { %280 = vperm.xlu1 %845, %v247_v29  }
  0x83   : > { %283 = vperm.xlu1 %845, %v248_v30  }
  0x87   : > { %289 = vperm.xlu1 %845, %v250_v31  }
  0x8b   : > { %295 = vperm.xlu1 %845, %v252_v32  }
  0x8f   : > { %301 = vperm.xlu1 %845, %v254_v33  }
  0xc7   : > { %v1206_v34 = vpop.xlane.xlu1 %374  ;;  %v1208_v35 = vpop.xlane.xlu0 %370 }
  0xc8   : > { %v402_v46 = vsub.f32 %v1130_v2, %v1208_v35  ;;  %v404_v60 = vsub.f32 %v1127_v1, %v1206_v34 }
  0xca   : > { %v418_v50 = vmul.f32 1.442695, %v402_v46  ;;  %v422_v19 = vmul.f32 1.442695, %v404_v60 }
  0xcb   : > { %v1210_v36 = vpop.xlane.xlu1 %376  ;;  %v1212_v37 = vpop.xlane.xlu0 %372 }
  0xcc   : > { %v405_v51 = vsub.f32 %v1135_v3, %v1210_v36  ;;  %v403_v54 = vsub.f32 %v1138_v4, %v1212_v37  ;;  %846 = vpow2.f32 %v418_v50 }
  0xce   : > { %v424_v55 = vmul.f32 1.442695, %v405_v51  ;;  %v420_v61 = vmul.f32 1.442695, %v403_v54 }
  0xcf   : > { %v1214_v38 = vpop.xlane.xlu1 %380  ;;  %v1216_v39 = vpop.xlane.xlu0 %378 }
  0xd0   : > { %v407_v56 = vsub.f32 %v1143_v6, %v1214_v38  ;;  %848 = vpow2.f32 %v424_v55  ;;  %v406_v20 = vsub.f32 %v1146_v7, %v1216_v39 }
  0xd1   : > { %850 = vpow2.f32 %v420_v61 }
  0xd2   : > { %v428_v62 = vmul.f32 1.442695, %v407_v56 }
  0xd3   : > { %v1218_v40 = vpop.xlane.xlu1 %384  ;;  %v1220_v41 = vpop.xlane.xlu0 %382 }
  0xd4   : > { %v409_v63 = vsub.f32 %v1151_v8, %v1218_v40  ;;  %852 = vpow2.f32 %v428_v62  ;;  %v408_v25 = vsub.f32 %v1154_v9, %v1220_v41 }
  0xd5   : > { %854 = vpow2.f32 %v422_v19 }
  0xd6   : > { %v432_v21 = vmul.f32 1.442695, %v409_v63  ;;  %v847_v24 = vpop.eup %846 }
  0xd7   : > { %v1222_v42 = vpop.xlane.xlu1 %388  ;;  %v1224_v43 = vpop.xlane.xlu0 %386 }
  0xd8   : > { %v411_v22 = vsub.f32 %v1159_v10, %v1222_v42  ;;  %856 = vpow2.f32 %v432_v21  ;;  %v410_v31 = vsub.f32 %v1162_v11, %v1224_v43 }
  0xda   : > { %v436_v26 = vmul.f32 1.442695, %v411_v22  ;;  %v849_v29 = vpop.eup %848  ;;  %v434_v51 = vmul.f32 1.442695, %v410_v31 }
  0xdb   : > { %v1226_v44 = vpop.xlane.xlu1 %392  ;;  %v1228_v45 = vpop.xlane.xlu0 %390 }
  0xdc   : > { %v412_v27 = vsub.f32 %v1170_v13, %v1228_v45  ;;  %v413_v32 = vsub.f32 %v1167_v12, %v1226_v44  ;;  %v851_v46 = vpop.eup %850 }
  0xde   : > { %v438_v33 = vmul.f32 1.442695, %v412_v27  ;;  %v853_v50 = vpop.eup %852  ;;  %v440_v54 = vmul.f32 1.442695, %v413_v32 }
  0xdf   : > { %v1232_v47 = vpop.xlane.xlu1 %396  ;;  %v1234_v49 = vpop.xlane.xlu0 %394 }
  0xe0   : > { %v855_v56 = vpop.eup %854 }
  0xe3   : > { %v1238_v52 = vpop.xlane.xlu1 %400  ;;  %v1247_v57 = vpop.xlane.xlu0 %398 }
  0xe4   : > { %v417_v19 = vsub.f32 %v1183_v16, %v1238_v52 }
  0xe7   : > { %v263_v58 = vpop.permute.xlu1 %262 }
  0xe8   : > { %vm307_vm0 = vcmp.eq.s32.totalorder %v1241_v53, %v263_v58  ;;  %v857_v58 = vpop.eup %856 }
  0xe9   : > { %v323_v59 = vsel %vm307_vm0, %v1138_v4, 0.0  ;;  %vm637_vm0 = vcmask 0  }
  0xea   : > { %340 = vadd.xlane.f32.xlu0 %v323_v59  ;;  %v415_v59 = vsub.f32 %v1175_v14, %v1232_v47 }
  0xeb   : > { %v266_v0 = vpop.permute.xlu1 %265  ;;  %v260_v5 = vpop.permute.xlu0 %259 }
  0xec   : > { %vm308_vm1 = vcmp.eq.s32.totalorder %v1241_v53, %v266_v0  ;;  %vm306_vm2 = vcmp.eq.s32.totalorder %v1241_v53, %v260_v5  ;;  %v444_v0 = vmul.f32 1.442695, %v415_v59  ;;  %v416_v5 = vsub.f32 %v1186_v17, %v1247_v57 }
  0xed   : > { %v324_v18 = vsel %vm308_vm1, %v1127_v1, 0.0  ;;  %v322_v4 = vsel %vm306_vm2, %v1130_v2, 0.0  ;;  %v426_v2 = vmul.f32 1.442695, %v406_v20 }
  0xee   : > { %342 = vadd.xlane.f32.xlu0 %v324_v18  ;;  %338 = vadd.xlane.f32.xlu1 %v322_v4  ;;  %v446_v20 = vmul.f32 1.442695, %v416_v5 }
  0xef   : > { %v269_v23 = vpop.permute.xlu1 %268  ;;  %858 = vpow2.f32 %v426_v2  ;;  %v287_v27 = vpop.permute.xlu0 %286 }
  0xf0   : > { %vm309_vm3 = vcmp.eq.s32.totalorder %v1241_v53, %v269_v23  ;;  %860 = vpow2.f32 %v436_v26  ;;  %vm315_vm9 = vcmp.eq.s32.totalorder %v1241_v53, %v287_v27 }
  0xf1   : > { %v325_v1 = vsel %vm309_vm3, %v1135_v3, 0.0  ;;  %v430_v3 = vmul.f32 1.442695, %v408_v25 }
  0xf2   : > { %344 = vadd.xlane.f32.xlu0 %v325_v1  ;;  %450 = vadd.xlane.f32.xlu1 %v847_v24  ;;  %v448_v24 = vmul.f32 1.442695, %v417_v19 }
  0xf3   : > { %v272_v28 = vpop.permute.xlu1 %271  ;;  %862 = vpow2.f32 %v430_v3 }
  0xf4   : > { %vm310_vm4 = vcmp.eq.s32.totalorder %v1241_v53, %v272_v28  ;;  %864 = vpow2.f32 %v438_v33 }
  0xf5   : > { %v326_v30 = vsel %vm310_vm4, %v1146_v7, 0.0  ;;  %v414_v7 = vsub.f32 %v1178_v15, %v1234_v49  ;;  %866 = vpow2.f32 %v434_v51 }
  0xf6   : > { %346 = vadd.xlane.f32.xlu0 %v326_v30  ;;  %456 = vadd.xlane.f32.xlu1 %v849_v29  ;;  %868 = vpow2.f32 %v440_v54 }
  0xf7   : > { %v275_v55 = vpop.permute.xlu1 %274  ;;  %v442_v60 = vmul.f32 1.442695, %v414_v7 }
  0xf8   : > { %vm311_vm5 = vcmp.eq.s32.totalorder %v1241_v53, %v275_v55 }
  0xf9   : > { %v859_v61 = vpop.eup %858  ;;  %870 = vpow2.f32 %v442_v60  ;;  %v327_v25 = vsel %vm311_vm5, %v1143_v6, 0.0  ;;  %v293_v6 = vpop.permute.xlu0 %292 }
  0xfa   : > { %452 = vadd.xlane.f32.xlu0 %v851_v46  ;;  %460 = vadd.xlane.f32.xlu1 %v853_v50  ;;  %v861_v62 = vpop.eup %860  ;;  %872 = vpow2.f32 %v444_v0  ;;  %vm317_vm11 = vcmp.eq.s32.totalorder %v1241_v53, %v293_v6 }
  0xfb   : > { %v278_v63 = vpop.permute.xlu1 %277  ;;  %874 = vpow2.f32 %v446_v20  ;;  %v333_v51 = vsel %vm317_vm11, %v1167_v12, 0.0 }
  0xfc   : > { %vm312_vm6 = vcmp.eq.s32.totalorder %v1241_v53, %v278_v63  ;;  %876 = vpow2.f32 %v448_v24 }
  0xfd   : > { %v863_v18 = vpop.eup %862  ;;  %v328_v28 = vsel %vm312_vm6, %v1154_v9, 0.0  ;;  %v299_v9 = vpop.permute.xlu0 %298 }
  0xfe   : > { %454 = vadd.xlane.f32.xlu0 %v855_v56  ;;  %464 = vadd.xlane.f32.xlu1 %v857_v58  ;;  %v865_v4 = vpop.eup %864  ;;  %vm319_vm13 = vcmp.eq.s32.totalorder %v1241_v53, %v299_v9 }
  0xff   : > { %v281_v21 = vpop.permute.xlu1 %280  ;;  %v867_v22 = vpop.eup %866  ;;  %v335_v54 = vsel %vm319_vm13, %v1175_v14, 0.0 }
 0x100   : > { %v869_v23 = vpop.eup %868  ;;  %vm313_vm7 = vcmp.eq.s32.totalorder %v1241_v53, %v281_v21 }
 0x101   : > { %v329_v3 = vsel %vm313_vm7, %v1151_v8, 0.0  ;;  %v331_v8 = vsel %vm315_vm9, %v1159_v10, 0.0  ;;  %v305_v10 = vpop.permute.xlu0 %304 }
 0x102   : > { %458 = vadd.xlane.f32.xlu0 %v859_v61  ;;  %468 = vadd.xlane.f32.xlu1 %v861_v62  ;;  %vm321_vm15 = vcmp.eq.s32.totalorder %v1241_v53, %v305_v10 }
 0x103   : > { %v871_v1 = vpop.eup %870  ;;  %v284_v2 = vpop.permute.xlu1 %283  ;;  %v337_v12 = vsel %vm321_vm15, %v1183_v16, 0.0 }
 0x104   : > { %v873_v26 = vpop.eup %872  ;;  %vm314_vm8 = vcmp.eq.s32.totalorder %v1241_v53, %v284_v2 }
 0x105   : > { %v875_v30 = vpop.eup %874  ;;  %v330_v33 = vsel %vm314_vm8, %v1162_v11, 0.0 }
 0x106   : > { %462 = vadd.xlane.f32.xlu0 %v863_v18  ;;  %470 = vadd.xlane.f32.xlu1 %v865_v4  ;;  %v877_v31 = vpop.eup %876 }
 0x107   : > { %v290_v29 = vpop.permute.xlu1 %289 }
 0x108   : > { %vm316_vm10 = vcmp.eq.s32.totalorder %v1241_v53, %v290_v29 }
 0x109   : > { %v332_v46 = vsel %vm316_vm10, %v1170_v13, 0.0 }
 0x10a   : > { %466 = vadd.xlane.f32.xlu0 %v867_v22  ;;  %472 = vadd.xlane.f32.xlu1 %v869_v23 }
 0x10b   : > { %v296_v32 = vpop.permute.xlu1 %295 }
 0x10c   : > { %vm318_vm12 = vcmp.eq.s32.totalorder %v1241_v53, %v296_v32 }
 0x10d   : > { %v334_v11 = vsel %vm318_vm12, %v1178_v15, 0.0  ;;  %v1014_v15 = vmov 0.0  }
 0x10e   : > { %348 = vadd.xlane.f32.xlu0 %v327_v25  ;;  %474 = vadd.xlane.f32.xlu1 %v871_v1  ;;  %638 = vst.msk [vmem:[%s1116_s18] sm:$0x1] %vm637_vm0, %v1014_v15 }
 0x10f   : > { %v302_v50 = vpop.permute.xlu1 %301 }
 0x110   : > { %vm320_vm14 = vcmp.eq.s32.totalorder %v1241_v53, %v302_v50 }
 0x111   : > { %v336_v13 = vsel %vm320_vm14, %v1186_v17, 0.0 }
 0x112   : > { %350 = vadd.xlane.f32.xlu0 %v328_v28  ;;  %476 = vadd.xlane.f32.xlu1 %v873_v26 }
 0x116   : > { %352 = vadd.xlane.f32.xlu0 %v329_v3  ;;  %478 = vadd.xlane.f32.xlu1 %v875_v30 }
 0x11a   : > { %354 = vadd.xlane.f32.xlu0 %v330_v33  ;;  %480 = vadd.xlane.f32.xlu1 %v877_v31 }
 0x11e   : > { %358 = vadd.xlane.f32.xlu0 %v332_v46  ;;  %356 = vadd.xlane.f32.xlu1 %v331_v8 }
 0x122   : > { %362 = vadd.xlane.f32.xlu0 %v334_v11  ;;  %360 = vadd.xlane.f32.xlu1 %v333_v51 }
 0x126   : > { %366 = vadd.xlane.f32.xlu0 %v336_v13  ;;  %364 = vadd.xlane.f32.xlu1 %v335_v54 }
 0x12a   : > { %368 = vadd.xlane.f32.xlu1 %v337_v12 }
 0x12b   : > { %935 = shalt.err (!%p932_p12)
}
 0x12c   : > { %s936_s7 = scalar_lea.hbm %s1312_s16, 2048  ;;  %s940_s11 = scalar_lea.hbm %s1444_s3, 4096 }
 0x12d   : > { %p937_p0 = scmp.ne.s32.totalorder %s1312_s16, %s936_s7  ;;  %p941_p3 = scmp.lt.u32.totalorder %s1312_s16, %s1444_s3 }
 0x12e   : > { %p942_p4 = scmp.lt.u32.totalorder %s940_s11, %s936_s7  ;;  %p944_p6 = scmp.lt.u32.totalorder %s936_s7, %s1312_s16 }
 0x12f   : > { %p938_p1 = pnand %p937_p0, %p1086_p9 }
 0x130   : > { %p943_p5 = por %p942_p4, %p941_p3 }
 0x131   : > { %p939_p2 = pneg %p938_p1 }
 0x132   : > { %p945_p7 = por %p944_p6, %p943_p5 }
 0x134   : > { %p946_p8 = pnand %p945_p7, %p939_p2 }
 0x136   : > { %949 = shalt.err (!%p946_p8)
}
 0x137   : > { %s1016_s14 = smov 128   ;;  %s1017_s15 = smov 8   ;;  %v1351_v63 = vshrl.u32 %v256_v48, 7  ;;  %v1355_v0 = vstv %s769_s12 }
 0x138   : > { %776 = dma.vmem_to_hbm [thread:$0]  (%p1086_p9), %s1314_s10, 2048, %s1312_s16, %s1318_s17, %s1016_s14, %s1016_s14, %s1017_s15  }
 0x139   : > { %v532_v5 = vadd.s32 8, %v1351_v63  ;;  %v548_v21 = vadd.s32 %v1355_v0, %v1351_v63  ;;  %v534_v22 = vadd.s32 24, %v1351_v63  ;;  %v533_v23 = vadd.s32 16, %v1351_v63 }
 0x13a   : > { %v536_v6 = vadd.s32 40, %v1351_v63  ;;  %v535_v9 = vadd.s32 32, %v1351_v63  ;;  %v537_v46 = vadd.s32 48, %v1351_v63  ;;  %v538_v51 = vadd.s32 56, %v1351_v63 }
 0x13b   : > { %v549_v48 = vadd.s32 %v1355_v0, %v532_v5  ;;  %vm564_vm1 = vcmp.lt.s32.totalorder %v548_v21, 256  ;;  %v551_v28 = vadd.s32 %v1355_v0, %v534_v22  ;;  %v550_v3 = vadd.s32 %v1355_v0, %v533_v23 }
 0x13c   : > { %v553_v12 = vadd.s32 %v1355_v0, %v536_v6 }
 0x13d   : > { %vm565_vm2 = vcmp.lt.s32.totalorder %v549_v48, 256  ;;  %vm567_vm3 = vcmp.lt.s32.totalorder %v551_v28, 256  ;;  %vm566_vm4 = vcmp.lt.s32.totalorder %v550_v3, 256  ;;  %v540_v28 = vadd.s32 72, %v1351_v63 }
 0x13e   : > { %vm569_vm6 = vcmp.lt.s32.totalorder %v553_v12, 256 }
 0x13f   : > { %v557_v12 = vadd.s32 %v1355_v0, %v540_v28 }
 0x141   : > { %vm573_vm10 = vcmp.lt.s32.totalorder %v557_v12, 256  ;;  %v639_v12 = vld [vmem:[%s1116_s18] sm:$0x1] }
 0x177   : > { %v341_v14 = vpop.xlane.xlu0 %340 }
 0x17b   : > { %v1342_v16 = vpop.xlane.xlu1 %338  ;;  %v1344_v17 = vpop.xlane.xlu0 %342 }
 0x17f   : > { %v451_v53 = vpop.xlane.xlu1 %450  ;;  %v1346_v7 = vpop.xlane.xlu0 %344 }
 0x180   : > { %878 = vlog2.f32 %v451_v53 }
 0x183   : > { %v457_v55 = vpop.xlane.xlu1 %456  ;;  %v1348_v56 = vpop.xlane.xlu0 %346 }
 0x184   : > { %880 = vlog2.f32 %v457_v55  ;;  %v554_v55 = vadd.s32 %v1355_v0, %v537_v46 }
 0x186   : > { %vm570_vm7 = vcmp.lt.s32.totalorder %v554_v55, 256  ;;  %v543_v55 = vadd.s32 96, %v1351_v63 }
 0x187   : > { %v461_v58 = vpop.xlane.xlu1 %460  ;;  %v453_v59 = vpop.xlane.xlu0 %452 }
 0x188   : > { %882 = vlog2.f32 %v453_v59 }
 0x189   : > { %884 = vlog2.f32 %v461_v58 }
 0x18a   : > { %v879_v62 = vpop.eup %878 }
 0x18b   : > { %v465_v60 = vpop.xlane.xlu1 %464  ;;  %v455_v61 = vpop.xlane.xlu0 %454  ;;  %v483_v18 = vmul.f32 0.6931472, %v879_v62  ;;  %v555_v62 = vadd.s32 %v1355_v0, %v538_v51 }
 0x18c   : > { %886 = vlog2.f32 %v455_v61 }
 0x18d   : > { %888 = vlog2.f32 %v465_v60  ;;  %v514_v1 = vadd.f32 %v483_v18, %v1208_v35  ;;  %vm571_vm8 = vcmp.lt.s32.totalorder %v555_v62, 256 }
 0x18e   : > { %v881_v20 = vpop.eup %880 }
 0x18f   : > { %v469_v4 = vpop.xlane.xlu1 %468  ;;  %v459_v19 = vpop.xlane.xlu0 %458  ;;  %v489_v26 = vmul.f32 0.6931472, %v881_v20  ;;  %v580_v32 = vsub.f32 %v514_v1, %v1342_v16 }
 0x190   : > { %890 = vlog2.f32 %v459_v19  ;;  %v539_v19 = vadd.s32 64, %v1351_v63 }
 0x191   : > { %v517_v8 = vadd.f32 %v489_v26, %v1210_v36  ;;  %v596_v16 = vsel %vm564_vm1, %v580_v32, 0.0 }
 0x192   : > { %v883_v24 = vpop.eup %882 }
 0x193   : > { %v471_v2 = vpop.xlane.xlu1 %470  ;;  %v463_v25 = vpop.xlane.xlu0 %462  ;;  %v485_v27 = vmul.f32 0.6931472, %v883_v24  ;;  %v583_v58 = vsub.f32 %v517_v8, %v1346_v7 }
 0x194   : > { %892 = vlog2.f32 %v463_v25  ;;  %v885_v29 = vpop.eup %884 }
 0x195   : > { %v515_v30 = vadd.f32 %v485_v27, %v1212_v37  ;;  %894 = vlog2.f32 %v469_v4  ;;  %v493_v37 = vmul.f32 0.6931472, %v885_v29  ;;  %v556_v27 = vadd.s32 %v1355_v0, %v539_v19 }
 0x196   : > { %v887_v31 = vpop.eup %886  ;;  %896 = vlog2.f32 %v471_v2 }
 0x197   : > { %v473_v35 = vpop.xlane.xlu1 %472  ;;  %v467_v33 = vpop.xlane.xlu0 %466  ;;  %v581_v50 = vsub.f32 %v515_v30, %v341_v14  ;;  %v487_v11 = vmul.f32 0.6931472, %v887_v31  ;;  %v552_v14 = vadd.s32 %v1355_v0, %v535_v9  ;;  %v519_v61 = vadd.f32 %v493_v37, %v1214_v38 }
 0x198   : > { %898 = vlog2.f32 %v467_v33  ;;  %v889_v10 = vpop.eup %888  ;;  %v599_v38 = vsel %vm567_vm3, %v583_v58, 0.0  ;;  %v541_v31 = vadd.s32 80, %v1351_v63  ;;  %vm572_vm9 = vcmp.lt.s32.totalorder %v556_v27, 256 }
 0x199   : > { %v597_v13 = vsel %vm565_vm2, %v581_v50, 0.0  ;;  %v516_v54 = vadd.f32 %v487_v11, %v1206_v34  ;;  %900 = vlog2.f32 %v473_v35  ;;  %v497_v5 = vmul.f32 0.6931472, %v889_v10 }
 0x19a   : > { %v891_v15 = vpop.eup %890  ;;  %v612_v34 = vadd.f32 %v597_v13, %v596_v16  ;;  %vm568_vm5 = vcmp.lt.s32.totalorder %v552_v14, 256  ;;  %v558_v16 = vadd.s32 %v1355_v0, %v541_v31 }
 0x19b   : > { %v475_v36 = vpop.xlane.xlu1 %474  ;;  %v349_v53 = vpop.xlane.xlu0 %348  ;;  %v582_v59 = vsub.f32 %v516_v54, %v1344_v17  ;;  %v491_v60 = vmul.f32 0.6931472, %v891_v15  ;;  %v521_v26 = vadd.f32 %v497_v5, %v1218_v40  ;;  %v544_v5 = vadd.s32 104, %v1351_v63 }
 0x19c   : > { %902 = vlog2.f32 %v475_v36  ;;  %v585_v7 = vsub.f32 %v519_v61, %v349_v53  ;;  %vm574_vm11 = vcmp.lt.s32.totalorder %v558_v16, 256 }
 0x19d   : > { %v598_v18 = vsel %vm566_vm4, %v582_v59, 0.0  ;;  %v518_v4 = vadd.f32 %v491_v60, %v1216_v39 }
 0x19e   : > { %v893_v20 = vpop.eup %892  ;;  %v613_v21 = vadd.f32 %v612_v34, %v598_v18 }
 0x19f   : > { %v477_v22 = vpop.xlane.xlu1 %476  ;;  %v351_v17 = vpop.xlane.xlu0 %350  ;;  %v584_v48 = vsub.f32 %v518_v4, %v1348_v56  ;;  %v495_v23 = vmul.f32 0.6931472, %v893_v20  ;;  %v601_v56 = vsel %vm569_vm6, %v585_v7, 0.0  ;;  %v545_v20 = vadd.s32 112, %v1351_v63 }
 0x1a0   : > { %v895_v24 = vpop.eup %894  ;;  %v614_v1 = vadd.f32 %v613_v21, %v599_v38  ;;  %904 = vlog2.f32 %v477_v22 }
 0x1a1   : > { %v897_v39 = vpop.eup %896  ;;  %v600_v2 = vsel %vm568_vm5, %v584_v48, 0.0  ;;  %v520_v25 = vadd.f32 %v495_v23, %v1220_v41  ;;  %v501_v9 = vmul.f32 0.6931472, %v895_v24  ;;  %v542_v41 = vadd.s32 88, %v1351_v63 }
 0x1a2   : > { %v899_v29 = vpop.eup %898  ;;  %v615_v30 = vadd.f32 %v614_v1, %v600_v2  ;;  %v503_v8 = vmul.f32 0.6931472, %v897_v39  ;;  %v561_v1 = vadd.s32 %v1355_v0, %v544_v5  ;;  %v546_v39 = vadd.s32 120, %v1351_v63 }
 0x1a3   : > { %v479_v3 = vpop.xlane.xlu1 %478  ;;  %v353_v6 = vpop.xlane.xlu0 %352  ;;  %v499_v32 = vmul.f32 0.6931472, %v899_v29  ;;  %v586_v35 = vsub.f32 %v520_v25, %v351_v17  ;;  %v523_v14 = vadd.f32 %v501_v9, %v1222_v42  ;;  %v559_v53 = vadd.s32 %v1355_v0, %v542_v41 }
 0x1a4   : > { %906 = vlog2.f32 %v479_v3  ;;  %v587_v33 = vsub.f32 %v521_v26, %v353_v6  ;;  %v616_v46 = vadd.f32 %v615_v30, %v601_v56  ;;  %v901_v40 = vpop.eup %900  ;;  %v524_v60 = vadd.f32 %v503_v8, %v1228_v45 }
 0x1a5   : > { %v602_v50 = vsel %vm570_vm7, %v586_v35, 0.0  ;;  %v522_v37 = vadd.f32 %v499_v32, %v1224_v43  ;;  %v505_v58 = vmul.f32 0.6931472, %v901_v40  ;;  %vm575_vm12 = vcmp.lt.s32.totalorder %v559_v53, 256 }
 0x1a6   : > { %v603_v11 = vsel %vm571_vm8, %v587_v33, 0.0  ;;  %v903_v51 = vpop.eup %902  ;;  %v617_v10 = vadd.f32 %v616_v46, %v602_v50  ;;  %v560_v42 = vadd.s32 %v1355_v0, %v543_v55  ;;  %vm577_vm14 = vcmp.lt.s32.totalorder %v561_v1, 256 }
 0x1a7   : > { %v481_v13 = vpop.xlane.xlu1 %480  ;;  %v355_v54 = vpop.xlane.xlu0 %354  ;;  %v507_v43 = vmul.f32 0.6931472, %v903_v51  ;;  %v525_v45 = vadd.f32 %v505_v58, %v1226_v44  ;;  %v562_v44 = vadd.s32 %v1355_v0, %v545_v20  ;;  %v563_v31 = vadd.s32 %v1355_v0, %v546_v39 }
 0x1a8   : > { %908 = vlog2.f32 %v481_v13  ;;  %v588_v15 = vsub.f32 %v522_v37, %v355_v54  ;;  %v618_v36 = vadd.f32 %v617_v10, %v603_v11  ;;  %vm576_vm13 = vcmp.lt.s32.totalorder %v560_v42, 256 }
 0x1a9   : > { %v526_v17 = vadd.f32 %v507_v43, %v1234_v49  ;;  %vm578_vm15 = vcmp.lt.s32.totalorder %v562_v44, 256  ;;  %vm579_vm1 = vcmp.lt.s32.totalorder %v563_v31, 256 }
 0x1aa   : > { %v604_v59 = vsel %vm572_vm9, %v588_v15, 0.0  ;;  %v905_v34 = vpop.eup %904 }
 0x1ab   : > { %v357_v61 = vpop.xlane.xlu1 %356  ;;  %v359_v62 = vpop.xlane.xlu0 %358  ;;  %v619_v19 = vadd.f32 %v618_v36, %v604_v59  ;;  %v509_v7 = vmul.f32 0.6931472, %v905_v34 }
 0x1ac   : > { %v589_v18 = vsub.f32 %v523_v14, %v357_v61  ;;  %v590_v4 = vsub.f32 %v524_v60, %v359_v62 }
 0x1ad   : > { %v527_v56 = vadd.f32 %v509_v7, %v1232_v47 }
 0x1ae   : > { %v907_v21 = vpop.eup %906  ;;  %v605_v22 = vsel %vm573_vm10, %v589_v18, 0.0  ;;  %v606_v2 = vsel %vm574_vm11, %v590_v4, 0.0 }
 0x1af   : > { %v511_v48 = vmul.f32 0.6931472, %v907_v21  ;;  %v620_v23 = vadd.f32 %v619_v19, %v605_v22  ;;  %v361_v38 = vpop.xlane.xlu1 %360  ;;  %v363_v24 = vpop.xlane.xlu0 %362 }
 0x1b0   : > { %v591_v25 = vsub.f32 %v525_v45, %v361_v38  ;;  %v592_v26 = vsub.f32 %v526_v17, %v363_v24 }
 0x1b1   : > { %v621_v27 = vadd.f32 %v620_v23, %v606_v2  ;;  %v528_v29 = vadd.f32 %v511_v48, %v1247_v57 }
 0x1b2   : > { %v909_v30 = vpop.eup %908  ;;  %v607_v49 = vsel %vm575_vm12, %v591_v25, 0.0  ;;  %v608_v32 = vsel %vm576_vm13, %v592_v26, 0.0 }
 0x1b3   : > { %v513_v3 = vmul.f32 0.6931472, %v909_v30  ;;  %v622_v6 = vadd.f32 %v621_v27, %v607_v49  ;;  %v365_v28 = vpop.xlane.xlu1 %364  ;;  %v367_v63 = vpop.xlane.xlu0 %366 }
 0x1b4   : > { %v593_v35 = vsub.f32 %v527_v56, %v365_v28  ;;  %v594_v33 = vsub.f32 %v528_v29, %v367_v63 }
 0x1b5   : > { %v623_v9 = vadd.f32 %v622_v6, %v608_v32  ;;  %v529_v57 = vadd.f32 %v513_v3, %v1238_v52 }
 0x1b6   : > { %v609_v46 = vsel %vm577_vm14, %v593_v35, 0.0  ;;  %v610_v40 = vsel %vm578_vm15, %v594_v33, 0.0 }
 0x1b7   : > { %v624_v41 = vadd.f32 %v623_v9, %v609_v46  ;;  %v369_v47 = vpop.xlane.xlu1 %368 }
 0x1b8   : > { %v595_v8 = vsub.f32 %v529_v57, %v369_v47 }
 0x1b9   : > { %v625_v50 = vadd.f32 %v624_v41, %v610_v40 }
 0x1ba   : > { %v611_v11 = vsel %vm579_vm1, %v595_v8, 0.0 }
 0x1bb   : > { %v626_v37 = vadd.f32 %v625_v50, %v611_v11 }
 0x1bd   : > { %v627_v51 = vrot.slane %v626_v37, 4 }
 0x1bf   : > { %v628_v0 = vadd.f32 %v627_v51, %v626_v37 }
 0x1c1   : > { %v629_v10 = vrot.slane %v628_v0, 2 }
 0x1c3   : > { %v630_v13 = vadd.f32 %v629_v10, %v628_v0 }
 0x1c5   : > { %v631_v54 = vrot.slane %v630_v13, 1 }
 0x1c7   : > { %v632_v15 = vadd.f32 %v631_v54, %v630_v13 }
 0x1c9   : > { %v640_v16 = vadd.f32 %v639_v12, %v632_v15 }
 0x1cb   : > { %642 = vst.msk [vmem:[%s1116_s18] sm:$0x1] %vm637_vm0, %v640_v16 }
 0x1cc PF: > { %p782_p9 = scmp.ge.s32.totalorder %s1006_s24, 2  ;;  %s679_s22 = sand.u32 1, %s986_s20  }
 0x1cd   : > { %s680_s29 = scalar_lea.sflag [#allocation5], %s679_s22 }
 0x1ce   : > { %p779_p10 = pnand %p782_p9, %p1093_p13 }
 0x1d0   : > { %981 = dma.done.wait (!%p779_p10), %s680_s29, 2048  }
 0x1d1   : > { %983 = vsyncadd (!%p779_p10), %s680_s29, 4294965248  ;;  %s24_s24 = sadd.s32 1, %s1006_s24   ;;  %s1448_s20 = smov %s990_s21 }
 0x1d2   : > { %p21_p11 = scmp.ge.s32.totalorder %s24_s24, 4   ;;  %s1449_s21 = smov %s994_s0 }
 0x1d3   : > { %s1450_s0 = smov %s1099_s6  ;;  %s1451_s22 = smov %s1002_s23 }
 0x1d4   : > { %s1452_s23 = smov %s1454_s27  ;;  %23 = sbr.rel (!%p21_p11) target bundleno = 19 (0x13), region = 99 }
 0x1db   :  { %691 = vsyncpa [#allocation5], 1 }
 0x1dc   :  { %693 = vsyncpa [#allocation5 + $0x1], 1 }

</bundles_post_ra>
